<compile_context>
chip_gen: v7x
topology: tpu7x:2x2x1
jax: 0.10.0
libtpu: 0.0.40
codegen_flags: <defaults>
</compile_context>

<pallas_src>
import functools

import jax
import jax.numpy as jnp
from jax.experimental import pallas as pl
from jax.experimental.pallas import tpu as pltpu


def _round_up(n, m):
    return ((n + m - 1) // m) * m


def _pick_tile(n, target):
    """Largest multiple of 128 that divides n and is <= target (fallback: n)."""
    best = None
    t = 128
    lim = min(n, target)
    while t <= lim:
        if n % t == 0:
            best = t
        t += 128
    return best if best is not None else n


def _vmem_limit(block_bytes):
    """Right-sized VMEM budget: double-buffered blocks + headroom, capped at
    32 MiB so it fits v7x (64 MiB/TC default-scoped 32 MiB) and v5e/v6e."""
    need = 2 * block_bytes                       # 2-deep pipeline buffers
    need = int(need * 1.25) + (2 << 20)          # headroom for scratch/regalloc
    return max(8 << 20, min(need, 32 << 20))


# ---------------------------------------------------------------------------
# Kernel 1: complex spectral channel mixing (core of fourier_conv_2d):
#   out[b, o, m] = sum_i x[b, i, m] * w[i, o, m]   (complex product, split re/im)
# m enumerates the retained low-frequency modes of both corners, flattened and
# zero-padded to a lane-dense multiple of 128.
# ---------------------------------------------------------------------------
def _spectral_mix_kernel(xr_ref, xi_ref, wr_ref, wi_ref, or_ref, oi_ref):
    # xr/xi: (Cin, tm); wr/wi: (Cin, Cout, tm); outputs: (Cout, tm).
    # Naive 4-mul/2-add complex product, accumulated per input channel so the
    # only live state is two (Cout, tm) accumulators (no (Cin, Cout, tm)
    # temporaries -> no vreg spill at larger channel counts, no Gauss form).
    cin = wr_ref.shape[0]
    acc_r = None
    acc_i = None
    for i in range(cin):                      # static unroll over input channels
        xr = xr_ref[pl.ds(i, 1), :]           # (1, tm)
        xi = xi_ref[pl.ds(i, 1), :]
        wr = wr_ref[i]                        # (Cout, tm)
        wi = wi_ref[i]
        pr = xr * wr - xi * wi
        pi = xr * wi + xi * wr
        acc_r = pr if acc_r is None else acc_r + pr
        acc_i = pi if acc_i is None else acc_i + pi
    or_ref[...] = acc_r
    oi_ref[...] = acc_i
    # TODO(synk): at production channel counts (C >= 32) restructure this as a
    # mode-batched MXU dot_general contracting Cin instead of the VPU loop.


def spectral_mix(xr, xi, wr, wi, *, tile_m_target=512, weight_budget_bytes=16 << 20):
    # xr/xi: (B, Cin, Mp) ; wr/wi: (Cin, Cout, Mp) ; Mp = lane-padded mode count.
    B, Cin, Mp = xr.shape
    Cout = wr.shape[1]
    # Derate the mode tile so 2 weight tensors x 2 pipeline buffers stay within
    # budget (keeps double-buffering alive on v7x's smaller VMEM).
    per_lane = 2 * 2 * Cin * Cout * 4
    max_tm = max(128, (weight_budget_bytes // per_lane) // 128 * 128)
    tm = _pick_tile(Mp, min(tile_m_target, max_tm))
    # Batch innermost (fastest) axis: the weight block index depends only on the
    # mode tile, so Pallas skips re-DMA of wr/wi across the whole batch loop.
    grid = (Mp // tm, B)

    x_spec = pl.BlockSpec((pl.Squeezed(), Cin, tm), lambda j, b: (b, 0, j))
    w_spec = pl.BlockSpec((Cin, Cout, tm), lambda j, b: (0, 0, j))
    o_spec = pl.BlockSpec((pl.Squeezed(), Cout, tm), lambda j, b: (b, 0, j))

    blk_bytes = 4 * (2 * Cin * tm + 2 * Cin * Cout * tm + 2 * Cout * tm)
    out_shape = (
        jax.ShapeDtypeStruct((B, Cout, Mp), jnp.float32),
        jax.ShapeDtypeStruct((B, Cout, Mp), jnp.float32),
    )
    return pl.pallas_call(
        _spectral_mix_kernel,
        out_shape=out_shape,
        grid_spec=pltpu.PrefetchScalarGridSpec(
            num_scalar_prefetch=0,
            grid=grid,
            in_specs=[x_spec, x_spec, w_spec, w_spec],
            out_specs=(o_spec, o_spec),
        ),
        compiler_params=pltpu.CompilerParams(
            dimension_semantics=("parallel", "parallel"),
            vmem_limit_bytes=_vmem_limit(blk_bytes),
        ),
    )(xr, xi, wr, wi)


# ---------------------------------------------------------------------------
# Kernel 2: fused inverse-DFT (precomputed basis matmul) + 1x1 conv + bias +
# residual add + ReLU.  Grid over (pixel tiles, batch), batch innermost.
# ---------------------------------------------------------------------------
def _fused_idft_conv_relu_kernel(x_ref, or_ref, oi_ref, br_ref, bi_ref,
                                 w_ref, b_ref, o_ref):
    # x: (Cin, tn); o_r/o_i: (C, Mp); br/bi: (Mp, tn); w: (Cout, Cin); b: (Cout,1)
    # Inverse real-DFT of the retained modes as two MXU matmuls (K = Mp) ...
    spec = jnp.dot(or_ref[...], br_ref[...], preferred_element_type=jnp.float32)
    spec = spec + jnp.dot(oi_ref[...], bi_ref[...], preferred_element_type=jnp.float32)
    # ... fused with the 1x1 conv (channel matmul), bias, residual add and ReLU.
    y = jnp.dot(w_ref[...], x_ref[...], preferred_element_type=jnp.float32)
    y = y + b_ref[...] + spec
    o_ref[...] = jnp.maximum(y, 0.0).astype(o_ref.dtype)


def fused_idft_conv_relu(x, o_r, o_i, br, bi, w, b, *,
                         tile_n_target=8192, basis_budget_bytes=16 << 20):
    # x: (B, Cin, Np); o_r/o_i: (B, C, Mp); br/bi: (Mp, Np); w: (Cout, Cin); b: (Cout, 1)
    B, Cin, Np = x.shape
    C, Mp = o_r.shape[1], o_r.shape[2]
    Cout = w.shape[0]
    # Large lane-dense pixel tile, derated so 2 basis tensors x 2 pipeline
    # buffers stay within budget.
    per_lane = 2 * 2 * Mp * 4
    max_tn = max(128, (basis_budget_bytes // per_lane) // 128 * 128)
    tn = _pick_tile(Np, min(tile_n_target, max_tn))
    # Batch innermost: basis / conv-weight blocks stay resident across it.
    grid = (Np // tn, B)

    x_spec = pl.BlockSpec((pl.Squeezed(), Cin, tn), lambda j, b_: (b_, 0, j))
    om_spec = pl.BlockSpec((pl.Squeezed(), C, Mp), lambda j, b_: (b_, 0, 0))
    basis_spec = pl.BlockSpec((Mp, tn), lambda j, b_: (0, j))
    w_spec = pl.BlockSpec((Cout, Cin), lambda j, b_: (0, 0))
    b_spec = pl.BlockSpec((Cout, 1), lambda j, b_: (0, 0))
    out_spec = pl.BlockSpec((pl.Squeezed(), Cout, tn), lambda j, b_: (b_, 0, j))

    blk_bytes = 4 * (Cin * tn + 2 * C * Mp + 2 * Mp * tn
                     + Cout * Cin + Cout + Cout * tn)
    # TODO(synk): carry x (and optionally the output) in bf16 to halve HBM
    # traffic where numerics allow; this kernel is bandwidth-bound at small C.
    return pl.pallas_call(
        _fused_idft_conv_relu_kernel,
        out_shape=jax.ShapeDtypeStruct((B, Cout, Np), jnp.float32),
        grid_spec=pltpu.PrefetchScalarGridSpec(
            num_scalar_prefetch=0,
            grid=grid,
            in_specs=[x_spec, om_spec, om_spec, basis_spec, basis_spec,
                      w_spec, b_spec],
            out_specs=out_spec,
        ),
        compiler_params=pltpu.CompilerParams(
            dimension_semantics=("parallel", "parallel"),
            vmem_limit_bytes=_vmem_limit(blk_bytes),
        ),
    )(x, o_r, o_i, br, bi, w, b)


# ---------------------------------------------------------------------------
# Parameter packing (done ONCE, outside the per-step forward)
# ---------------------------------------------------------------------------
def init_params(key, C, m1, m2):
    """Deterministic synthetic parameters matching the PyTorch module shapes."""
    k1, k2, k3, k4, k5, k6 = jax.random.split(key, 6)
    scale = 1.0 / (C * C)                                          # standard FNO init
    return {
        "w1r": scale * jax.random.uniform(k1, (C, C, m1, m2), jnp.float32),
        "w1i": scale * jax.random.uniform(k2, (C, C, m1, m2), jnp.float32),
        "w2r": scale * jax.random.uniform(k3, (C, C, m1, m2), jnp.float32),
        "w2i": scale * jax.random.uniform(k4, (C, C, m1, m2), jnp.float32),
        "w_conv": 0.1 * jax.random.normal(k5, (C, C, 1, 1), jnp.float32),
        "b_conv": 0.1 * jax.random.normal(k6, (C,), jnp.float32),
    }


def _build_inv_rdft_basis(H, W, m1, m2):
    """Real/imag inverse-rDFT basis rows for the 2*m1*m2 retained corner modes.

    Built by applying jnp.fft.irfft2 to unit spectra, so by linearity
    (o_r @ Br + o_i @ Bi) is numerically equal to scattering the mixed modes
    into a zero spectrum and calling irfft2 (what the PyTorch module does)."""
    M = m1 * m2
    Wh = W // 2 + 1
    idx = jnp.arange(M)
    r = idx // m2
    c = idx % m2
    spec = jnp.zeros((2 * M, H, Wh), jnp.complex64)
    spec = spec.at[idx, r, c].set(1.0)
    spec = spec.at[M + idx, (H - m1) + r, c].set(1.0)
    br = jnp.fft.irfft2(spec, s=(H, W), axes=(-2, -1)).reshape(2 * M, H * W)
    bi = jnp.fft.irfft2(1j * spec, s=(H, W), axes=(-2, -1)).reshape(2 * M, H * W)
    return br.astype(jnp.float32), bi.astype(jnp.float32)


def prepare_params(params, C, m1, m2, H, W):
    """Hoisted (one-time) weight packing + inverse-DFT basis for a given (H, W)."""
    assert 2 * m1 <= H and m2 <= W // 2 + 1, (
        "corner mode blocks must not overlap (standard FNO usage)")
    M = m1 * m2
    N = H * W
    Mp = _round_up(2 * M, 128)          # lane-dense mode axis
    Np = _round_up(N, 128)              # lane-dense pixel axis (128-aligned stores)

    wr = jnp.concatenate(
        [params["w1r"].reshape(C, C, M), params["w2r"].reshape(C, C, M)], axis=-1)
    wi = jnp.concatenate(
        [params["w1i"].reshape(C, C, M), params["w2i"].reshape(C, C, M)], axis=-1)
    wr = jnp.pad(wr, ((0, 0), (0, 0), (0, Mp - 2 * M)))
    wi = jnp.pad(wi, ((0, 0), (0, 0), (0, Mp - 2 * M)))

    br, bi = _build_inv_rdft_basis(H, W, m1, m2)
    br = jnp.pad(br, ((0, Mp - 2 * M), (0, Np - N)))
    bi = jnp.pad(bi, ((0, Mp - 2 * M), (0, Np - N)))

    return {
        "wr": wr,                                  # (Cin, Cout, Mp)
        "wi": wi,
        "br": br,                                  # (Mp, Np)
        "bi": bi,
        "w_conv": params["w_conv"].reshape(C, C),  # (Cout, Cin)
        "b_conv": params["b_conv"].reshape(C, 1),  # (Cout, 1)
    }


# ---------------------------------------------------------------------------
# IO_layer forward
# ---------------------------------------------------------------------------
def io_layer_forward(x, packed, *, modes1, modes2):
    """x: (B, C, H, W) float32, NCHW like the PyTorch module."""
    B, C, H, W = x.shape
    M = modes1 * modes2
    Mp = packed["wr"].shape[-1]
    N = H * W
    Np = packed["br"].shape[-1]

    # ---- forward FFT ----
    # TODO(synk): rfft2 has no Pallas primitive; the forward FFT stays as XLA
    # glue, all dense compute below runs in Pallas kernels.
    x_ft = jnp.fft.rfft2(x, axes=(-2, -1))                     # (B,C,H,W//2+1) c64
    c1 = x_ft[:, :, :modes1, :modes2].reshape(B, C, M)
    c2 = x_ft[:, :, -modes1:, :modes2].reshape(B, C, M)
    x_modes = jnp.concatenate([c1, c2], axis=-1)               # (B, C, 2M)
    xr = jnp.real(x_modes).astype(jnp.float32)
    xi = jnp.imag(x_modes).astype(jnp.float32)
    if Mp != 2 * M:
        xr = jnp.pad(xr, ((0, 0), (0, 0), (0, Mp - 2 * M)))
        xi = jnp.pad(xi, ((0, 0), (0, 0), (0, Mp - 2 * M)))

    # ---- Pallas kernel 1: complex spectral channel mixing ----
    o_r, o_i = spectral_mix(xr, xi, packed["wr"], packed["wi"])  # (B, C, Mp)

    # ---- Pallas kernel 2: fused inverse-DFT + 1x1 conv + bias + add + ReLU ----
    x_flat = x.reshape(B, C, N)
    if Np != N:
        x_flat = jnp.pad(x_flat, ((0, 0), (0, 0), (0, Np - N)))
    out_flat = fused_idft_conv_relu(x_flat, o_r, o_i,
                                    packed["br"], packed["bi"],
                                    packed["w_conv"], packed["b_conv"])
    out = out_flat[:, :, :N].reshape(B, C, H, W)

    # Dropout(p=0.0) is the identity -> nothing to do.
    return out


if __name__ == "__main__":
    B, C, H, W = 2, 4, 16, 16
    m1, m2 = 4, 4                      # wavenumber = (modes1, modes2)

    key = jax.random.PRNGKey(0)
    kx, kp = jax.random.split(key)
    x = jax.random.normal(kx, (B, C, H, W), jnp.float32)
    raw = init_params(kp, C, m1, m2)
    packed = prepare_params(raw, C, m1, m2, H, W)

    fwd = jax.jit(functools.partial(io_layer_forward, modes1=m1, modes2=m2))
    out = fwd(x, packed)
    jax.block_until_ready(out)

    # Pure-JAX reference of the same forward pass (correctness sanity check).
    def ref_forward(xin, p):
        x_ft = jnp.fft.rfft2(xin, axes=(-2, -1))
        w1 = p["w1r"] + 1j * p["w1i"]
        w2 = p["w2r"] + 1j * p["w2i"]
        out_ft = jnp.zeros_like(x_ft)
        out_ft = out_ft.at[:, :, :m1, :m2].set(
            jnp.einsum("bixy,ioxy->boxy", x_ft[:, :, :m1, :m2], w1))
        out_ft = out_ft.at[:, :, -m1:, :m2].set(
            jnp.einsum("bixy,ioxy->boxy", x_ft[:, :, -m1:, :m2], w2))
        spec = jnp.fft.irfft2(out_ft, s=(H, W), axes=(-2, -1)).real
        conv = (jnp.einsum("oi,bihw->bohw", p["w_conv"].reshape(C, C), xin)
                + p["b_conv"].reshape(1, C, 1, 1))
        return jax.nn.relu(spec + conv)

    ref = ref_forward(x, raw)
    assert out.shape == (B, C, H, W)
    assert bool(jnp.all(out >= 0.0))                       # ReLU output
    err = float(jnp.max(jnp.abs(out - ref)))
    assert jnp.allclose(out, ref, atol=1e-4, rtol=1e-4), err
    print("KERNEL_OK")
</pallas_src>

<mosaic_0001>
module attributes {stable_mosaic.version = 11 : i64} {
  func.func @_spectral_mix_kernel(%arg0: i32, %arg1: i32, %arg2: memref<1x4x128xf32, #tpu.memory_space<vmem>>, %arg3: memref<1x4x128xf32, #tpu.memory_space<vmem>>, %arg4: memref<4x4x128xf32, #tpu.memory_space<vmem>>, %arg5: memref<4x4x128xf32, #tpu.memory_space<vmem>>, %arg6: memref<1x4x128xf32, #tpu.memory_space<vmem>>, %arg7: memref<1x4x128xf32, #tpu.memory_space<vmem>>) attributes {dimension_semantics = [#tpu.dimension_semantics<parallel>, #tpu.dimension_semantics<parallel>], iteration_bounds = array<i64: 1, 2>, scalar_prefetch = 0 : i64, scratch_operands = 0 : i64, tpu.core_type = #tpu.core_type<tc>, window_params = [{transform_indices = @transform_0, window_bounds = array<i64: 1, 4, 128>}, {transform_indices = @transform_1, window_bounds = array<i64: 1, 4, 128>}, {transform_indices = @transform_2, window_bounds = array<i64: 4, 4, 128>}, {transform_indices = @transform_3, window_bounds = array<i64: 4, 4, 128>}, {transform_indices = @transform_4, window_bounds = array<i64: 1, 4, 128>}, {transform_indices = @transform_5, window_bounds = array<i64: 1, 4, 128>}]} {
    %c0 = arith.constant 0 : index
    %c0_0 = arith.constant 0 : index
    %c0_1 = arith.constant 0 : index
    %0 = vector.load %arg2[%c0, %c0_0, %c0_1] : memref<1x4x128xf32, #tpu.memory_space<vmem>>, vector<1x1x128xf32>
    %1 = vector.shape_cast %0 : vector<1x1x128xf32> to vector<1x128xf32>
    %c0_2 = arith.constant 0 : index
    %c0_3 = arith.constant 0 : index
    %c0_4 = arith.constant 0 : index
    %2 = vector.load %arg3[%c0_2, %c0_3, %c0_4] : memref<1x4x128xf32, #tpu.memory_space<vmem>>, vector<1x1x128xf32>
    %3 = vector.shape_cast %2 : vector<1x1x128xf32> to vector<1x128xf32>
    %c0_5 = arith.constant 0 : index
    %c0_6 = arith.constant 0 : index
    %c0_7 = arith.constant 0 : index
    %4 = vector.load %arg4[%c0_5, %c0_6, %c0_7] : memref<4x4x128xf32, #tpu.memory_space<vmem>>, vector<1x4x128xf32>
    %5 = vector.shape_cast %4 : vector<1x4x128xf32> to vector<4x128xf32>
    %c0_8 = arith.constant 0 : index
    %c0_9 = arith.constant 0 : index
    %c0_10 = arith.constant 0 : index
    %6 = vector.load %arg5[%c0_8, %c0_9, %c0_10] : memref<4x4x128xf32, #tpu.memory_space<vmem>>, vector<1x4x128xf32>
    %7 = vector.shape_cast %6 : vector<1x4x128xf32> to vector<4x128xf32>
    %8 = vector.broadcast %1 : vector<1x128xf32> to vector<4x128xf32>
    %9 = arith.mulf %8, %5 : vector<4x128xf32>
    %10 = vector.broadcast %3 : vector<1x128xf32> to vector<4x128xf32>
    %11 = arith.mulf %10, %7 : vector<4x128xf32>
    %12 = arith.subf %9, %11 : vector<4x128xf32>
    %13 = vector.broadcast %1 : vector<1x128xf32> to vector<4x128xf32>
    %14 = arith.mulf %13, %7 : vector<4x128xf32>
    %15 = vector.broadcast %3 : vector<1x128xf32> to vector<4x128xf32>
    %16 = arith.mulf %15, %5 : vector<4x128xf32>
    %17 = arith.addf %14, %16 : vector<4x128xf32>
    %c0_11 = arith.constant 0 : index
    %c1 = arith.constant 1 : index
    %c0_12 = arith.constant 0 : index
    %18 = vector.load %arg2[%c0_11, %c1, %c0_12] : memref<1x4x128xf32, #tpu.memory_space<vmem>>, vector<1x1x128xf32>
    %19 = vector.shape_cast %18 : vector<1x1x128xf32> to vector<1x128xf32>
    %c0_13 = arith.constant 0 : index
    %c1_14 = arith.constant 1 : index
    %c0_15 = arith.constant 0 : index
    %20 = vector.load %arg3[%c0_13, %c1_14, %c0_15] : memref<1x4x128xf32, #tpu.memory_space<vmem>>, vector<1x1x128xf32>
    %21 = vector.shape_cast %20 : vector<1x1x128xf32> to vector<1x128xf32>
    %c1_16 = arith.constant 1 : index
    %c0_17 = arith.constant 0 : index
    %c0_18 = arith.constant 0 : index
    %22 = vector.load %arg4[%c1_16, %c0_17, %c0_18] : memref<4x4x128xf32, #tpu.memory_space<vmem>>, vector<1x4x128xf32>
    %23 = vector.shape_cast %22 : vector<1x4x128xf32> to vector<4x128xf32>
    %c1_19 = arith.constant 1 : index
    %c0_20 = arith.constant 0 : index
    %c0_21 = arith.constant 0 : index
    %24 = vector.load %arg5[%c1_19, %c0_20, %c0_21] : memref<4x4x128xf32, #tpu.memory_space<vmem>>, vector<1x4x128xf32>
    %25 = vector.shape_cast %24 : vector<1x4x128xf32> to vector<4x128xf32>
    %26 = vector.broadcast %19 : vector<1x128xf32> to vector<4x128xf32>
    %27 = arith.mulf %26, %23 : vector<4x128xf32>
    %28 = vector.broadcast %21 : vector<1x128xf32> to vector<4x128xf32>
    %29 = arith.mulf %28, %25 : vector<4x128xf32>
    %30 = arith.subf %27, %29 : vector<4x128xf32>
    %31 = vector.broadcast %19 : vector<1x128xf32> to vector<4x128xf32>
    %32 = arith.mulf %31, %25 : vector<4x128xf32>
    %33 = vector.broadcast %21 : vector<1x128xf32> to vector<4x128xf32>
    %34 = arith.mulf %33, %23 : vector<4x128xf32>
    %35 = arith.addf %32, %34 : vector<4x128xf32>
    %36 = arith.addf %12, %30 : vector<4x128xf32>
    %37 = arith.addf %17, %35 : vector<4x128xf32>
    %c0_22 = arith.constant 0 : index
    %c2 = arith.constant 2 : index
    %c0_23 = arith.constant 0 : index
    %38 = vector.load %arg2[%c0_22, %c2, %c0_23] : memref<1x4x128xf32, #tpu.memory_space<vmem>>, vector<1x1x128xf32>
    %39 = vector.shape_cast %38 : vector<1x1x128xf32> to vector<1x128xf32>
    %c0_24 = arith.constant 0 : index
    %c2_25 = arith.constant 2 : index
    %c0_26 = arith.constant 0 : index
    %40 = vector.load %arg3[%c0_24, %c2_25, %c0_26] : memref<1x4x128xf32, #tpu.memory_space<vmem>>, vector<1x1x128xf32>
    %41 = vector.shape_cast %40 : vector<1x1x128xf32> to vector<1x128xf32>
    %c2_27 = arith.constant 2 : index
    %c0_28 = arith.constant 0 : index
    %c0_29 = arith.constant 0 : index
    %42 = vector.load %arg4[%c2_27, %c0_28, %c0_29] : memref<4x4x128xf32, #tpu.memory_space<vmem>>, vector<1x4x128xf32>
    %43 = vector.shape_cast %42 : vector<1x4x128xf32> to vector<4x128xf32>
    %c2_30 = arith.constant 2 : index
    %c0_31 = arith.constant 0 : index
    %c0_32 = arith.constant 0 : index
    %44 = vector.load %arg5[%c2_30, %c0_31, %c0_32] : memref<4x4x128xf32, #tpu.memory_space<vmem>>, vector<1x4x128xf32>
    %45 = vector.shape_cast %44 : vector<1x4x128xf32> to vector<4x128xf32>
    %46 = vector.broadcast %39 : vector<1x128xf32> to vector<4x128xf32>
    %47 = arith.mulf %46, %43 : vector<4x128xf32>
    %48 = vector.broadcast %41 : vector<1x128xf32> to vector<4x128xf32>
    %49 = arith.mulf %48, %45 : vector<4x128xf32>
    %50 = arith.subf %47, %49 : vector<4x128xf32>
    %51 = vector.broadcast %39 : vector<1x128xf32> to vector<4x128xf32>
    %52 = arith.mulf %51, %45 : vector<4x128xf32>
    %53 = vector.broadcast %41 : vector<1x128xf32> to vector<4x128xf32>
    %54 = arith.mulf %53, %43 : vector<4x128xf32>
    %55 = arith.addf %52, %54 : vector<4x128xf32>
    %56 = arith.addf %36, %50 : vector<4x128xf32>
    %57 = arith.addf %37, %55 : vector<4x128xf32>
    %c0_33 = arith.constant 0 : index
    %c3 = arith.constant 3 : index
    %c0_34 = arith.constant 0 : index
    %58 = vector.load %arg2[%c0_33, %c3, %c0_34] : memref<1x4x128xf32, #tpu.memory_space<vmem>>, vector<1x1x128xf32>
    %59 = vector.shape_cast %58 : vector<1x1x128xf32> to vector<1x128xf32>
    %c0_35 = arith.constant 0 : index
    %c3_36 = arith.constant 3 : index
    %c0_37 = arith.constant 0 : index
    %60 = vector.load %arg3[%c0_35, %c3_36, %c0_37] : memref<1x4x128xf32, #tpu.memory_space<vmem>>, vector<1x1x128xf32>
    %61 = vector.shape_cast %60 : vector<1x1x128xf32> to vector<1x128xf32>
    %c3_38 = arith.constant 3 : index
    %c0_39 = arith.constant 0 : index
    %c0_40 = arith.constant 0 : index
    %62 = vector.load %arg4[%c3_38, %c0_39, %c0_40] : memref<4x4x128xf32, #tpu.memory_space<vmem>>, vector<1x4x128xf32>
    %63 = vector.shape_cast %62 : vector<1x4x128xf32> to vector<4x128xf32>
    %c3_41 = arith.constant 3 : index
    %c0_42 = arith.constant 0 : index
    %c0_43 = arith.constant 0 : index
    %64 = vector.load %arg5[%c3_41, %c0_42, %c0_43] : memref<4x4x128xf32, #tpu.memory_space<vmem>>, vector<1x4x128xf32>
    %65 = vector.shape_cast %64 : vector<1x4x128xf32> to vector<4x128xf32>
    %66 = vector.broadcast %59 : vector<1x128xf32> to vector<4x128xf32>
    %67 = arith.mulf %66, %63 : vector<4x128xf32>
    %68 = vector.broadcast %61 : vector<1x128xf32> to vector<4x128xf32>
    %69 = arith.mulf %68, %65 : vector<4x128xf32>
    %70 = arith.subf %67, %69 : vector<4x128xf32>
    %71 = vector.broadcast %59 : vector<1x128xf32> to vector<4x128xf32>
    %72 = arith.mulf %71, %65 : vector<4x128xf32>
    %73 = vector.broadcast %61 : vector<1x128xf32> to vector<4x128xf32>
    %74 = arith.mulf %73, %63 : vector<4x128xf32>
    %75 = arith.addf %72, %74 : vector<4x128xf32>
    %76 = arith.addf %56, %70 : vector<4x128xf32>
    %77 = arith.addf %57, %75 : vector<4x128xf32>
    %c0_44 = arith.constant 0 : index
    %c0_45 = arith.constant 0 : index
    %c0_46 = arith.constant 0 : index
    %78 = vector.load %arg6[%c0_44, %c0_45, %c0_46] : memref<1x4x128xf32, #tpu.memory_space<vmem>>, vector<1x4x128xf32>
    %79 = vector.shape_cast %78 : vector<1x4x128xf32> to vector<4x128xf32>
    %80 = vector.shape_cast %76 : vector<4x128xf32> to vector<1x4x128xf32>
    tpu.vector_store %arg6[%c0_44, %c0_45, %c0_46], %80 {strides = array<i32>} : memref<1x4x128xf32, #tpu.memory_space<vmem>>, vector<1x4x128xf32>,
    %c0_47 = arith.constant 0 : index
    %c0_48 = arith.constant 0 : index
    %c0_49 = arith.constant 0 : index
    %81 = vector.load %arg7[%c0_47, %c0_48, %c0_49] : memref<1x4x128xf32, #tpu.memory_space<vmem>>, vector<1x4x128xf32>
    %82 = vector.shape_cast %81 : vector<1x4x128xf32> to vector<4x128xf32>
    %83 = vector.shape_cast %77 : vector<4x128xf32> to vector<1x4x128xf32>
    tpu.vector_store %arg7[%c0_47, %c0_48, %c0_49], %83 {strides = array<i32>} : memref<1x4x128xf32, #tpu.memory_space<vmem>>, vector<1x4x128xf32>,
    return
  }
  func.func @transform_0(%arg0: i32, %arg1: i32) -> (i32, i32, i32) {
    %c0_i32 = arith.constant 0 : i32
    %c0_i32_0 = arith.constant 0 : i32
    return %arg1, %c0_i32, %arg0 : i32, i32, i32
  }
  func.func @transform_1(%arg0: i32, %arg1: i32) -> (i32, i32, i32) {
    %c0_i32 = arith.constant 0 : i32
    %c0_i32_0 = arith.constant 0 : i32
    return %arg1, %c0_i32, %arg0 : i32, i32, i32
  }
  func.func @transform_2(%arg0: i32, %arg1: i32) -> (i32, i32, i32) {
    %c0_i32 = arith.constant 0 : i32
    %c0_i32_0 = arith.constant 0 : i32
    %c0_i32_1 = arith.constant 0 : i32
    return %c0_i32, %c0_i32_0, %arg0 : i32, i32, i32
  }
  func.func @transform_3(%arg0: i32, %arg1: i32) -> (i32, i32, i32) {
    %c0_i32 = arith.constant 0 : i32
    %c0_i32_0 = arith.constant 0 : i32
    %c0_i32_1 = arith.constant 0 : i32
    return %c0_i32, %c0_i32_0, %arg0 : i32, i32, i32
  }
  func.func @transform_4(%arg0: i32, %arg1: i32) -> (i32, i32, i32) {
    %c0_i32 = arith.constant 0 : i32
    %c0_i32_0 = arith.constant 0 : i32
    return %arg1, %c0_i32, %arg0 : i32, i32, i32
  }
  func.func @transform_5(%arg0: i32, %arg1: i32) -> (i32, i32, i32) {
    %c0_i32 = arith.constant 0 : i32
    %c0_i32_0 = arith.constant 0 : i32
    return %arg1, %c0_i32, %arg0 : i32, i32, i32
  }
}

module attributes {stable_mosaic.version = 11 : i64} {
  func.func @_fused_idft_conv_relu_kernel(%arg0: i32, %arg1: i32, %arg2: memref<1x4x256xf32, #tpu.memory_space<vmem>>, %arg3: memref<1x4x128xf32, #tpu.memory_space<vmem>>, %arg4: memref<1x4x128xf32, #tpu.memory_space<vmem>>, %arg5: memref<128x256xf32, #tpu.memory_space<vmem>>, %arg6: memref<128x256xf32, #tpu.memory_space<vmem>>, %arg7: memref<4x4xf32, #tpu.memory_space<vmem>>, %arg8: memref<4x1xf32, #tpu.memory_space<vmem>>, %arg9: memref<1x4x256xf32, #tpu.memory_space<vmem>>) attributes {dimension_semantics = [#tpu.dimension_semantics<parallel>, #tpu.dimension_semantics<parallel>], iteration_bounds = array<i64: 1, 2>, scalar_prefetch = 0 : i64, scratch_operands = 0 : i64, tpu.core_type = #tpu.core_type<tc>, window_params = [{transform_indices = @transform_0, window_bounds = array<i64: 1, 4, 256>}, {transform_indices = @transform_1, window_bounds = array<i64: 1, 4, 128>}, {transform_indices = @transform_2, window_bounds = array<i64: 1, 4, 128>}, {transform_indices = @transform_3, window_bounds = array<i64: 128, 256>}, {transform_indices = @transform_4, window_bounds = array<i64: 128, 256>}, {pipeline_mode = #tpu.pipeline_mode<synchronous>, transform_indices = @transform_5, window_bounds = array<i64: 4, 4>}, {pipeline_mode = #tpu.pipeline_mode<synchronous>, transform_indices = @transform_6, window_bounds = array<i64: 4, 1>}, {transform_indices = @transform_7, window_bounds = array<i64: 1, 4, 256>}]} {
    %c0 = arith.constant 0 : index
    %c0_0 = arith.constant 0 : index
    %c0_1 = arith.constant 0 : index
    %0 = vector.load %arg3[%c0, %c0_0, %c0_1] : memref<1x4x128xf32, #tpu.memory_space<vmem>>, vector<1x4x128xf32>
    %1 = vector.shape_cast %0 : vector<1x4x128xf32> to vector<4x128xf32>
    %c0_2 = arith.constant 0 : index
    %c0_3 = arith.constant 0 : index
    %2 = vector.load %arg5[%c0_2, %c0_3] : memref<128x256xf32, #tpu.memory_space<vmem>>, vector<128x256xf32>
    %cst = arith.constant dense<0.000000e+00> : vector<4x256xf32>
    %3 = tpu.matmul %1, %2, %cst {dimension_numbers = #tpu.dot_dimension_numbers<[1], [0], [0], [1], [0, 0, 1, 1], [], []>} : vector<4x128xf32>, vector<128x256xf32>, vector<4x256xf32> -> vector<4x256xf32>
    %c0_4 = arith.constant 0 : index
    %c0_5 = arith.constant 0 : index
    %c0_6 = arith.constant 0 : index
    %4 = vector.load %arg4[%c0_4, %c0_5, %c0_6] : memref<1x4x128xf32, #tpu.memory_space<vmem>>, vector<1x4x128xf32>
    %5 = vector.shape_cast %4 : vector<1x4x128xf32> to vector<4x128xf32>
    %c0_7 = arith.constant 0 : index
    %c0_8 = arith.constant 0 : index
    %6 = vector.load %arg6[%c0_7, %c0_8] : memref<128x256xf32, #tpu.memory_space<vmem>>, vector<128x256xf32>
    %cst_9 = arith.constant dense<0.000000e+00> : vector<4x256xf32>
    %7 = tpu.matmul %5, %6, %cst_9 {dimension_numbers = #tpu.dot_dimension_numbers<[1], [0], [0], [1], [0, 0, 1, 1], [], []>} : vector<4x128xf32>, vector<128x256xf32>, vector<4x256xf32> -> vector<4x256xf32>
    %8 = arith.addf %3, %7 : vector<4x256xf32>
    %c0_10 = arith.constant 0 : index
    %c0_11 = arith.constant 0 : index
    %9 = vector.load %arg7[%c0_10, %c0_11] : memref<4x4xf32, #tpu.memory_space<vmem>>, vector<4x4xf32>
    %c0_12 = arith.constant 0 : index
    %c0_13 = arith.constant 0 : index
    %c0_14 = arith.constant 0 : index
    %10 = vector.load %arg2[%c0_12, %c0_13, %c0_14] : memref<1x4x256xf32, #tpu.memory_space<vmem>>, vector<1x4x256xf32>
    %11 = vector.shape_cast %10 : vector<1x4x256xf32> to vector<4x256xf32>
    %cst_15 = arith.constant dense<0.000000e+00> : vector<4x256xf32>
    %12 = tpu.matmul %9, %11, %cst_15 {dimension_numbers = #tpu.dot_dimension_numbers<[1], [0], [0], [1], [0, 0, 1, 1], [], []>} : vector<4x4xf32>, vector<4x256xf32>, vector<4x256xf32> -> vector<4x256xf32>
    %c0_16 = arith.constant 0 : index
    %c0_17 = arith.constant 0 : index
    %13 = vector.load %arg8[%c0_16, %c0_17] : memref<4x1xf32, #tpu.memory_space<vmem>>, vector<4x1xf32>
    %14 = vector.broadcast %13 : vector<4x1xf32> to vector<4x256xf32>
    %15 = arith.addf %12, %14 : vector<4x256xf32>
    %16 = arith.addf %15, %8 : vector<4x256xf32>
    %cst_18 = arith.constant 0.000000e+00 : f32
    %17 = vector.broadcast %cst_18 : f32 to vector<4x256xf32>
    %18 = arith.maximumf %16, %17 : vector<4x256xf32>
    %c0_19 = arith.constant 0 : index
    %c0_20 = arith.constant 0 : index
    %c0_21 = arith.constant 0 : index
    %19 = vector.load %arg9[%c0_19, %c0_20, %c0_21] : memref<1x4x256xf32, #tpu.memory_space<vmem>>, vector<1x4x256xf32>
    %20 = vector.shape_cast %19 : vector<1x4x256xf32> to vector<4x256xf32>
    %21 = vector.shape_cast %18 : vector<4x256xf32> to vector<1x4x256xf32>
    tpu.vector_store %arg9[%c0_19, %c0_20, %c0_21], %21 {strides = array<i32>} : memref<1x4x256xf32, #tpu.memory_space<vmem>>, vector<1x4x256xf32>,
    return
  }
  func.func @transform_0(%arg0: i32, %arg1: i32) -> (i32, i32, i32) {
    %c0_i32 = arith.constant 0 : i32
    %c0_i32_0 = arith.constant 0 : i32
    return %arg1, %c0_i32, %arg0 : i32, i32, i32
  }
  func.func @transform_1(%arg0: i32, %arg1: i32) -> (i32, i32, i32) {
    %c0_i32 = arith.constant 0 : i32
    %c0_i32_0 = arith.constant 0 : i32
    %c0_i32_1 = arith.constant 0 : i32
    return %arg1, %c0_i32, %c0_i32_0 : i32, i32, i32
  }
  func.func @transform_2(%arg0: i32, %arg1: i32) -> (i32, i32, i32) {
    %c0_i32 = arith.constant 0 : i32
    %c0_i32_0 = arith.constant 0 : i32
    %c0_i32_1 = arith.constant 0 : i32
    return %arg1, %c0_i32, %c0_i32_0 : i32, i32, i32
  }
  func.func @transform_3(%arg0: i32, %arg1: i32) -> (i32, i32) {
    %c0_i32 = arith.constant 0 : i32
    %c0_i32_0 = arith.constant 0 : i32
    return %c0_i32, %arg0 : i32, i32
  }
  func.func @transform_4(%arg0: i32, %arg1: i32) -> (i32, i32) {
    %c0_i32 = arith.constant 0 : i32
    %c0_i32_0 = arith.constant 0 : i32
    return %c0_i32, %arg0 : i32, i32
  }
  func.func @transform_5(%arg0: i32, %arg1: i32) -> (i32, i32) {
    %c0_i32 = arith.constant 0 : i32
    %c0_i32_0 = arith.constant 0 : i32
    %c0_i32_1 = arith.constant 0 : i32
    return %c0_i32, %c0_i32_0 : i32, i32
  }
  func.func @transform_6(%arg0: i32, %arg1: i32) -> (i32, i32) {
    %c0_i32 = arith.constant 0 : i32
    %c0_i32_0 = arith.constant 0 : i32
    %c0_i32_1 = arith.constant 0 : i32
    return %c0_i32, %c0_i32_0 : i32, i32
  }
  func.func @transform_7(%arg0: i32, %arg1: i32) -> (i32, i32, i32) {
    %c0_i32 = arith.constant 0 : i32
    %c0_i32_0 = arith.constant 0 : i32
    return %arg1, %c0_i32, %arg0 : i32, i32, i32
  }
}

</mosaic_0001>

<bundles_post_ra>
// kernel: io_layer_forward.3
= control target key start
LH: loop header
LB: loop body
LE: loop exit
PB: predicated region body
PF: predicated region fallthrough
CT: control target
= control target key end

     0   :  { %s1028_s24 = smov 0   ;;  %s1030_s25 = smov 0   ;;  %s1282_s0 = inlined_call_operand.vmem [shape: f32[2,4,256], index: 0, kind: input, shape index: {}]   ;;  %s1283_s1 = inlined_call_operand.vmem [shape: f32[2,4,128], index: 1, kind: input, shape index: {}]   ;;  %s1284_s2 = inlined_call_operand.vmem [shape: f32[2,4,128], index: 2, kind: input, shape index: {}]   ;;  %s1285_s3 = inlined_call_operand.vmem [shape: f32[128,256], index: 3, kind: input, shape index: {}]   ;;  %s1286_s4 = inlined_call_operand.vmem [shape: f32[128,256], index: 4, kind: input, shape index: {}]   ;;  %s1287_s5 = inlined_call_operand.vmem [shape: f32[4,4], index: 5, kind: input, shape index: {}]   ;;  %s1288_s6 = inlined_call_operand.vmem [shape: f32[4,1], index: 6, kind: input, shape index: {}]   ;;  %s1289_s7 = inlined_call_operand.vmem [shape: f32[2,4,256], index: 7, kind: output, shape index: {}]  }
   0x1   :  { %s1032_s26 = smov 0  }
   0x2 LB: > { %s26_s27 = sadd.s32 1, %s980_s25  ;;  %p850_p0 = scmp.ge.s32.totalorder %s984_s26, 1  ;;  %s984_s26 = sphi %s1032_s26, %s17_s26   ;;  %s980_s25 = sphi %s1030_s25, %s1291_s25   ;;  %s976_s24 = sphi %s1028_s24, %s1290_s24  }
   0x3   : > { %p27_p1 = scmp.ge.s32.totalorder %s26_s27, 2  ;;  %p298_p2 = scmp.lt.s32.totalorder %s984_s26, 3 }
   0x5   : > { %s1293_s27 = smov (%p27_p1, %s26_s27), 0  ;;  %p299_p3 = pnand %p850_p0, %p298_p2 }
   0x6   : > { %v398_v0 = vld [vmem:[%s1285_s3 + $0x8] sm:$0xff] (!%p299_p3)  ;;  %v400_v1 = vld [vmem:[%s1285_s3 + $0x18] sm:$0xff] (!%p299_p3)  ;;  %v397_v2 = vld [vmem:[%s1285_s3] sm:$0xff] (!%p299_p3)  ;;  %v986_v7 = vmov (!%p299_p3), 0.0   ;;  %v987_v13 = vmov (!%p299_p3), 0   ;;  %p357_p4 = scmp.lt.s32.totalorder (!%p299_p3), %s976_s24, 1 }
   0x7   : > { %302 = sbr.rel (%p299_p3) target bundleno = 269 (0x10d), region = 48  ;;  %v896_v3 = vpack.c.bf16 (!%p299_p3), %v400_v1, %v398_v0  ;;  %v399_v4 = vld [vmem:[%s1285_s3 + $0x10] sm:$0xff] (!%p299_p3)  ;;  %v402_v5 = vld [vmem:[%s1285_s3 + $0x28] sm:$0xff] (!%p299_p3)  ;;  %v404_v6 = vld [vmem:[%s1285_s3 + $0x38] sm:$0xff] (!%p299_p3)  ;;  %597 = vmatprep.mubr.f32.mxu0 (!%p299_p3), %v986_v7  ;;  %526 = vmatprep.mubr.f32.mxu1 (!%p299_p3), %v986_v7  ;;  %vm618_vm0 = vcmask (!%p299_p3), 1043456   ;;  %vm614_vm1 = vcmask (!%p299_p3), 31744  }
   0x8   : > { %v898_v8 = vpack.c.bf16 (!%p299_p3), %v399_v4, %v397_v2  ;;  %v900_v9 = vpack.c.bf16 (!%p299_p3), %v404_v6, %v402_v5  ;;  %v401_v10 = vld [vmem:[%s1285_s3 + $0x20] sm:$0xff] (!%p299_p3)  ;;  %v403_v11 = vld [vmem:[%s1285_s3 + $0x30] sm:$0xff] (!%p299_p3)  ;;  %v431_v12 = vld [vmem:[%s1286_s4 + $0x8] sm:$0xff] (!%p299_p3)  ;;  %960 = vset.pattern.permute.xlu0 (!%p299_p3), %v987_v13 }
   0x9   : > { %897 = vmatprep.subr.bf16.mxu0 (!%p299_p3), %v896_v3  ;;  %v433_v14 = vld [vmem:[%s1286_s4 + $0x18] sm:$0xff] (!%p299_p3)  ;;  %v430_v15 = vld [vmem:[%s1286_s4] sm:$0xff] (!%p299_p3)  ;;  %v432_v16 = vld [vmem:[%s1286_s4 + $0x10] sm:$0xff] (!%p299_p3)  ;;  %v902_v17 = vpack.c.bf16 (!%p299_p3), %v403_v11, %v401_v10 }
   0xa   : > { %899 = vmatpush1.bf16.msra.mxu0 (!%p299_p3), %v898_v8  ;;  %v864_v18 = vpack.c.bf16 (!%p299_p3), %v433_v14, %v431_v12  ;;  %v866_v19 = vpack.c.bf16 (!%p299_p3), %v432_v16, %v430_v15  ;;  %v406_v20 = vld [vmem:[%s1285_s3 + $0x48] sm:$0xff] (!%p299_p3)  ;;  %v408_v21 = vld [vmem:[%s1285_s3 + $0x58] sm:$0xff] (!%p299_p3)  ;;  %v405_v22 = vld [vmem:[%s1285_s3 + $0x40] sm:$0xff] (!%p299_p3) }
   0xb   : > { %901 = vmatprep.subr.bf16.mxu0 (!%p299_p3), %v900_v9  ;;  %v904_v23 = vpack.c.bf16 (!%p299_p3), %v408_v21, %v406_v20  ;;  %v407_v24 = vld [vmem:[%s1285_s3 + $0x50] sm:$0xff] (!%p299_p3)  ;;  %v435_v25 = vld [vmem:[%s1286_s4 + $0x28] sm:$0xff] (!%p299_p3)  ;;  %v437_v26 = vld [vmem:[%s1286_s4 + $0x38] sm:$0xff] (!%p299_p3) }
   0xc   : > { %865 = vmatprep.subr.bf16.mxu1 (!%p299_p3), %v864_v18  ;;  %v868_v27 = vpack.c.bf16 (!%p299_p3), %v437_v26, %v435_v25  ;;  %v434_v28 = vld [vmem:[%s1286_s4 + $0x20] sm:$0xff] (!%p299_p3)  ;;  %v436_v29 = vld [vmem:[%s1286_s4 + $0x30] sm:$0xff] (!%p299_p3)  ;;  %v410_v30 = vld [vmem:[%s1285_s3 + $0x68] sm:$0xff] (!%p299_p3)  ;;  %v906_v33 = vpack.c.bf16 (!%p299_p3), %v407_v24, %v405_v22 }
   0xd   : > { %867 = vmatpush1.bf16.msra.mxu1 (!%p299_p3), %v866_v19  ;;  %v870_v31 = vpack.c.bf16 (!%p299_p3), %v436_v29, %v434_v28  ;;  %v412_v32 = vld [vmem:[%s1285_s3 + $0x78] sm:$0xff] (!%p299_p3)  ;;  %v439_v34 = vld [vmem:[%s1286_s4 + $0x48] sm:$0xff] (!%p299_p3)  ;;  %v438_v36 = vld [vmem:[%s1286_s4 + $0x40] sm:$0xff] (!%p299_p3) }
   0xe   : > { %903 = vmatpush1.bf16.msra.mxu0 %v902_v17  ;;  %869 = vmatprep.subr.bf16.mxu1 %v868_v27  ;;  %v441_v35 = vld [vmem:[%s1286_s4 + $0x58] sm:$0xff]  ;;  %v908_v37 = vpack.c.bf16 %v412_v32, %v410_v30  ;;  %v409_v38 = vld [vmem:[%s1285_s3 + $0x60] sm:$0xff]  ;;  %v411_v39 = vld [vmem:[%s1285_s3 + $0x70] sm:$0xff]  ;;  %s1295_s24 = smov (!%p357_p4, %s976_s24), 1 }
   0xf   : > { %905 = vmatprep.subr.bf16.mxu0 %v904_v23  ;;  %v872_v40 = vpack.c.bf16 %v441_v35, %v439_v34  ;;  %v440_v41 = vld [vmem:[%s1286_s4 + $0x50] sm:$0xff]  ;;  %v414_v42 = vld [vmem:[%s1285_s3 + $0x88] sm:$0xff]  ;;  %v416_v43 = vld [vmem:[%s1285_s3 + $0x98] sm:$0xff]  ;;  %v910_v47 = vpack.c.bf16 %v411_v39, %v409_v38  ;;  %s862_s12 = sshll.u32 %s1295_s24, 3  ;;  %s853_s22 = sshll.u32 %s1295_s24, 2 }
  0x10   : > { %v443_v44 = vld [vmem:[%s1286_s4 + $0x68] sm:$0xff]  ;;  %v874_v45 = vpack.c.bf16 %v440_v41, %v438_v36  ;;  %v445_v46 = vld [vmem:[%s1286_s4 + $0x78] sm:$0xff]  ;;  %v413_v48 = vld [vmem:[%s1285_s3 + $0x80] sm:$0xff]  ;;  %v912_v52 = vpack.c.bf16 %v416_v43, %v414_v42  ;;  %s364_s8 = scalar_lea.vmem %s1282_s0, %s862_s12  ;;  %s369_s11 = scalar_lea.vmem %s1283_s1, %s853_s22 }
  0x11   : > { %871 = vmatpush1.bf16.msra.mxu1 %v870_v31  ;;  %v876_v49 = vpack.c.bf16 %v445_v46, %v443_v44  ;;  %v442_v50 = vld [vmem:[%s1286_s4 + $0x60] sm:$0xff]  ;;  %v444_v51 = vld [vmem:[%s1286_s4 + $0x70] sm:$0xff]  ;;  %v447_v54 = vld [vmem:[%s1286_s4 + $0x88] sm:$0xff]  ;;  %s373_s14 = scalar_lea.vmem %s1284_s2, %s853_s22  ;;  %s394_s19 = scalar_lea.vmem %s1289_s7, %s862_s12 }
  0x12   : > { %907 = vmatpush1.bf16.msra.mxu0 %v906_v33  ;;  %873 = vmatprep.subr.bf16.mxu1 %v872_v40  ;;  %v415_v53 = vld [vmem:[%s1285_s3 + $0x90] sm:$0xff]  ;;  %v449_v55 = vld [vmem:[%s1286_s4 + $0x98] sm:$0xff]  ;;  %v418_v56 = vld [vmem:[%s1285_s3 + $0xa8] sm:$0xff]  ;;  %v878_v58 = vpack.c.bf16 %v444_v51, %v442_v50 }
  0x13   : > { %909 = vmatprep.subr.bf16.mxu0 %v908_v37  ;;  %v420_v57 = vld [vmem:[%s1285_s3 + $0xb8] sm:$0xff]  ;;  %v914_v59 = vpack.c.bf16 %v415_v53, %v413_v48  ;;  %v417_v60 = vld [vmem:[%s1285_s3 + $0xa0] sm:$0xff]  ;;  %v880_v61 = vpack.c.bf16 %v449_v55, %v447_v54  ;;  %v448_v63 = vld [vmem:[%s1286_s4 + $0x90] sm:$0xff] }
  0x14   : > { %v446_v62 = vld [vmem:[%s1286_s4 + $0x80] sm:$0xff]  ;;  %v916_v0 = vpack.c.bf16 %v420_v57, %v418_v56  ;;  %v419_v1 = vld [vmem:[%s1285_s3 + $0xb0] sm:$0xff]  ;;  %v451_v2 = vld [vmem:[%s1286_s4 + $0xa8] sm:$0xff] }
  0x15   : > { %875 = vmatpush1.bf16.msra.mxu1 %v874_v45  ;;  %v453_v3 = vld [vmem:[%s1286_s4 + $0xb8] sm:$0xff]  ;;  %v422_v4 = vld [vmem:[%s1285_s3 + $0xc8] sm:$0xff]  ;;  %v882_v6 = vpack.c.bf16 %v448_v63, %v446_v62  ;;  %v918_v8 = vpack.c.bf16 %v419_v1, %v417_v60  ;;  %v421_v9 = vld [vmem:[%s1285_s3 + $0xc0] sm:$0xff] }
  0x16   : > { %911 = vmatpush1.bf16.msra.mxu0 %v910_v47  ;;  %877 = vmatprep.subr.bf16.mxu1 %v876_v49  ;;  %v424_v5 = vld [vmem:[%s1285_s3 + $0xd8] sm:$0xff]  ;;  %v884_v10 = vpack.c.bf16 %v453_v3, %v451_v2  ;;  %v450_v11 = vld [vmem:[%s1286_s4 + $0xa0] sm:$0xff]  ;;  %v452_v12 = vld [vmem:[%s1286_s4 + $0xb0] sm:$0xff] }
  0x17   : > { %913 = vmatprep.subr.bf16.mxu0 %v912_v52  ;;  %v920_v13 = vpack.c.bf16 %v424_v5, %v422_v4  ;;  %v423_v14 = vld [vmem:[%s1285_s3 + $0xd0] sm:$0xff]  ;;  %v455_v15 = vld [vmem:[%s1286_s4 + $0xc8] sm:$0xff]  ;;  %v457_v16 = vld [vmem:[%s1286_s4 + $0xd8] sm:$0xff]  ;;  %v886_v20 = vpack.c.bf16 %v452_v12, %v450_v11 }
  0x18   : > { %v426_v17 = vld [vmem:[%s1285_s3 + $0xe8] sm:$0xff]  ;;  %v428_v18 = vld [vmem:[%s1285_s3 + $0xf8] sm:$0xff]  ;;  %v606_v19 = vld [vmem:[%s1288_s6] sm:$0xf]  ;;  %v922_v21 = vpack.c.bf16 %v423_v14, %v421_v9  ;;  %v888_v23 = vpack.c.bf16 %v457_v16, %v455_v15 }
  0x19   : > { %879 = vmatpush1.bf16.msra.mxu1 %v878_v58  ;;  %609 = vperm.xlu0 %960, %v606_v19   ;;  %v425_v22 = vld [vmem:[%s1285_s3 + $0xe0] sm:$0xff]  ;;  %v456_v25 = vld [vmem:[%s1286_s4 + $0xd0] sm:$0xff]  ;;  %v924_v26 = vpack.c.bf16 %v428_v18, %v426_v17  ;;  %v459_v28 = vld [vmem:[%s1286_s4 + $0xe8] sm:$0xff] }
  0x1a   : > { %915 = vmatpush1.bf16.msra.mxu0 %v914_v59  ;;  %881 = vmatprep.subr.bf16.mxu1 %v880_v61  ;;  %v454_v24 = vld [vmem:[%s1286_s4 + $0xc0] sm:$0xff]  ;;  %v427_v27 = vld [vmem:[%s1285_s3 + $0xf0] sm:$0xff]  ;;  %v461_v29 = vld [vmem:[%s1286_s4 + $0xf8] sm:$0xff] }
  0x1b   : > { %917 = vmatprep.subr.bf16.mxu0 %v916_v0  ;;  %v605_v30 = vld [vmem:[%s364_s8] sm:$0xff]  ;;  %v890_v31 = vpack.c.bf16 %v456_v25, %v454_v24  ;;  %v926_v32 = vpack.c.bf16 %v427_v27, %v425_v22  ;;  %v892_v33 = vpack.c.bf16 %v461_v29, %v459_v28  ;;  %v460_v35 = vld [vmem:[%s1286_s4 + $0xf0] sm:$0xff] }
  0x1c   : > { %v458_v34 = vld [vmem:[%s1286_s4 + $0xe0] sm:$0xff]  ;;  %v613_v36 = vcombine.high %v605_v30, %v605_v30 }
  0x1d   : > { %883 = vmatpush1.bf16.msra.mxu1 %v882_v6  ;;  %v894_v37 = vpack.c.bf16 %v460_v35, %v458_v34  ;;  %v396_v38 = vld [vmem:[%s369_s11] sm:$0xf] }
  0x1e   : > { %919 = vmatpush1.bf16.msra.mxu0 %v918_v8  ;;  %885 = vmatprep.subr.bf16.mxu1 %v884_v10  ;;  %v429_v39 = vld [vmem:[%s373_s14] sm:$0xf] }
  0x1f   : > { %921 = vmatprep.subr.bf16.mxu0 %v920_v13  ;;  %v604_v40 = vld [vmem:[%s1287_s5] sm:$0xf] }
  0x21   : > { %887 = vmatpush1.bf16.msra.mxu1 %v886_v20 }
  0x22   : > { %923 = vmatpush1.bf16.msra.mxu0 %v922_v21  ;;  %889 = vmatprep.subr.bf16.mxu1 %v888_v23 }
  0x23   : > { %925 = vmatprep.subr.bf16.mxu0 %v924_v26 }
  0x25   : > { %891 = vmatpush1.bf16.msra.mxu1 %v890_v31 }
  0x26   : > { %927 = vmatpush1.bf16.msra.mxu0 %v926_v32  ;;  %893 = vmatprep.subr.bf16.mxu1 %v892_v33 }
  0x27   : > { %857 = vmatprep.subr.msk.mxu0 %vm618_vm0, %v613_v36 }
  0x29   : > { %598 = vmatmul.mubr.f32.vlgmr.msra.gmra.mrb[0].mxu0 %v396_v38  ;;  %895 = vmatpush1.bf16.msra.mxu1 %v894_v37 }
  0x2a   : > { %858 = vmatpush1.msk.msra.mxu0 %vm618_vm0, %v605_v30  ;;  %687 = vmatprep.mubr.f32.mxu0 %v986_v7 }
  0x2c   : > { %527 = vmatmul.mubr.f32.vlgmr.msra.gmra.mrb[0].mxu1 %v429_v39 }
  0x31   : > { %859 = vmatmul.mubr.msk.f32.vlgmr.msra.gmra.mrb[0].mxu0 %vm614_vm1, %v604_v40 }
  0x98   : > { %v610_v41 = vpop.permute.xlu0 %609 }
  0xff   : > { %v528_v42 = vpop.f32.mrb[0].mxu1 }
 0x100   : > { %v530_v43 = vpop.f32.mrb[1].mxu1  ;;  %v928_v44 = vadd.f32 %v610_v41, %v528_v42 }
 0x101   : > { %v930_v45 = vadd.f32 %v610_v41, %v530_v43 }
 0x104   : > { %v689_v46 = vpop.f32.mrb[0].mxu0 }
 0x105   : > { %v929_v47 = vadd.f32 %v928_v44, %v689_v46  ;;  %v691_v48 = vpop.f32.mrb[1].mxu0 }
 0x106   : > { %v931_v49 = vadd.f32 %v930_v45, %v691_v48 }
 0x107   : > { %v696_v50 = vmax.f32 %v929_v47, 0.0 }
 0x108   : > { %v697_v51 = vmax.f32 %v931_v49, 0.0 }
 0x10a   : > { %v700_v7 = vcombine.low %v696_v50, %v697_v51 }
 0x10c   : > { %702 = vst [vmem:[%s394_s19] sm:$0xff] %v700_v7 }
 0x10d PF: > { %s17_s26 = sadd.s32 1, %s984_s26   ;;  %s1290_s24 = smov %s980_s25 }
 0x10e   : > { %p14_p5 = scmp.ge.s32.totalorder %s17_s26, 4   ;;  %s1291_s25 = smov %s1293_s27 }
 0x110   :  { %16 = sbr.rel (!%p14_p5) target bundleno = 2 (0x2), region = 90 }

// kernel: io_layer_forward.2
= control target key start
LH: loop header
LB: loop body
LE: loop exit
PB: predicated region body
PF: predicated region fallthrough
CT: control target
= control target key end

     0   :  { %s684_s18 = smov 0   ;;  %s686_s19 = smov 0   ;;  %s753_s0 = inlined_call_operand.vmem [shape: f32[2,4,128], index: 0, kind: input, shape index: {}]   ;;  %s754_s1 = inlined_call_operand.vmem [shape: f32[2,4,128], index: 1, kind: input, shape index: {}]   ;;  %s755_s2 = inlined_call_operand.vmem [shape: f32[4,4,128], index: 2, kind: input, shape index: {}]   ;;  %s756_s3 = inlined_call_operand.vmem [shape: f32[4,4,128], index: 3, kind: input, shape index: {}]   ;;  %s757_s4 = inlined_call_operand.vmem [shape: f32[2,4,128], index: 4, kind: output, shape index: {0}]   ;;  %s758_s5 = inlined_call_operand.vmem [shape: f32[2,4,128], index: 5, kind: output, shape index: {1}]  }
   0x1   :  { %s688_s20 = smov 0  }
   0x2 LB: > { %s25_s21 = sadd.s32 1, %s648_s19  ;;  %p585_p0 = scmp.ge.s32.totalorder %s652_s20, 1  ;;  %s652_s20 = sphi %s688_s20, %s16_s20   ;;  %s648_s19 = sphi %s686_s19, %s760_s19   ;;  %s644_s18 = sphi %s684_s18, %s759_s18  }
   0x3   : > { %p26_p1 = scmp.ge.s32.totalorder %s25_s21, 2  ;;  %p242_p2 = scmp.lt.s32.totalorder %s652_s20, 3 }
   0x5   : > { %s762_s21 = smov (%p26_p1, %s25_s21), 0  ;;  %p243_p3 = pnand %p585_p0, %p242_p2 }
   0x6   : > { %p296_p4 = scmp.lt.s32.totalorder (!%p243_p3), %s644_s18, 1  ;;  %v334_v0 = vld [vmem:[%s755_s2] sm:$0xf] (!%p243_p3)  ;;  %v592_v2 = vld [vmem:[%s755_s2 + $0x4] sm:$0xf] (!%p243_p3) }
   0x7   : > { %246 = sbr.rel (%p243_p3) target bundleno = 31 (0x1f), region = 36  ;;  %v335_v1 = vld [vmem:[%s756_s3] sm:$0xf] (!%p243_p3)  ;;  %v593_v3 = vld [vmem:[%s756_s3 + $0x4] sm:$0xf] (!%p243_p3) }
   0x8   : > { %v596_v4 = vld [vmem:[%s755_s2 + $0x8] sm:$0xf] (!%p243_p3)  ;;  %v600_v6 = vld [vmem:[%s755_s2 + $0xc] sm:$0xf] (!%p243_p3) }
   0x9   : > { %v597_v5 = vld [vmem:[%s756_s3 + $0x8] sm:$0xf] (!%p243_p3)  ;;  %v601_v7 = vld [vmem:[%s756_s3 + $0xc] sm:$0xf] (!%p243_p3) }
   0xe   : > { %s764_s18 = smov (!%p296_p4, %s644_s18), 1 }
   0xf   : > { %s711_s28 = sshll.u32 %s764_s18, 2 }
  0x10   : > { %s302_s10 = scalar_lea.vmem %s753_s0, %s711_s28  ;;  %s309_s13 = scalar_lea.vmem %s754_s1, %s711_s28 }
  0x11   : > { %v590_v8 = vld [vmem:[%s302_s10] ss:$0 sm:$0xff]  ;;  %v594_v10 = vld [vmem:[%s302_s10 + $0x1] ss:$0 sm:$0xff]  ;;  %v598_v15 = vld [vmem:[%s302_s10 + $0x2] ss:$0 sm:$0xff]  ;;  %s324_s25 = scalar_lea.vmem %s757_s4, %s711_s28  ;;  %s331_s29 = scalar_lea.vmem %s758_s5, %s711_s28 }
  0x12   : > { %v591_v9 = vld [vmem:[%s309_s13] ss:$0 sm:$0xff]  ;;  %v340_v11 = vmul.f32 %v590_v8, %v334_v0  ;;  %v595_v13 = vld [vmem:[%s309_s13 + $0x1] ss:$0 sm:$0xff]  ;;  %v360_v14 = vmul.f32 %v594_v10, %v592_v2  ;;  %v599_v16 = vld [vmem:[%s309_s13 + $0x2] ss:$0 sm:$0xff]  ;;  %v347_v17 = vmul.f32 %v590_v8, %v335_v1  ;;  %v382_v19 = vmul.f32 %v598_v15, %v596_v4 }
  0x13   : > { %v345_v12 = vmul.f32 %v591_v9, %v335_v1  ;;  %v365_v18 = vmul.f32 %v595_v13, %v593_v3  ;;  %v387_v20 = vmul.f32 %v599_v16, %v597_v5  ;;  %v602_v21 = vld [vmem:[%s302_s10 + $0x3] ss:$0 sm:$0xff]  ;;  %v348_v23 = vmul.f32 %v591_v9, %v334_v0 }
  0x14   : > { %v603_v22 = vld [vmem:[%s309_s13 + $0x3] ss:$0 sm:$0xff]  ;;  %v404_v25 = vmul.f32 %v602_v21, %v600_v6  ;;  %v367_v27 = vmul.f32 %v594_v10, %v593_v3  ;;  %v368_v31 = vmul.f32 %v595_v13, %v592_v2  ;;  %v389_v32 = vmul.f32 %v598_v15, %v597_v5 }
  0x15   : > { %v346_v24 = vsub.f32 %v340_v11, %v345_v12  ;;  %v409_v26 = vmul.f32 %v603_v22, %v601_v7  ;;  %v366_v28 = vsub.f32 %v360_v14, %v365_v18  ;;  %v388_v29 = vsub.f32 %v382_v19, %v387_v20 }
  0x16   : > { %v349_v30 = vadd.f32 %v348_v23, %v347_v17  ;;  %v390_v33 = vmul.f32 %v599_v16, %v596_v4  ;;  %v411_v34 = vmul.f32 %v602_v21, %v601_v7  ;;  %v369_v37 = vadd.f32 %v368_v31, %v367_v27 }
  0x17   : > { %v370_v35 = vadd.f32 %v366_v28, %v346_v24  ;;  %v410_v36 = vsub.f32 %v404_v25, %v409_v26  ;;  %v412_v38 = vmul.f32 %v603_v22, %v600_v6 }
  0x18   : > { %v391_v39 = vadd.f32 %v390_v33, %v389_v32  ;;  %v371_v41 = vadd.f32 %v369_v37, %v349_v30 }
  0x19   : > { %v392_v40 = vadd.f32 %v388_v29, %v370_v35  ;;  %v413_v42 = vadd.f32 %v412_v38, %v411_v34 }
  0x1a   : > { %v393_v44 = vadd.f32 %v391_v39, %v371_v41 }
  0x1b   : > { %v414_v43 = vadd.f32 %v410_v36, %v392_v40 }
  0x1c   : > { %v415_v45 = vadd.f32 %v413_v42, %v393_v44 }
  0x1d   : > { %416 = vst [vmem:[%s324_s25] sm:$0xf] %v414_v43 }
  0x1e   : > { %417 = vst [vmem:[%s331_s29] sm:$0xf] %v415_v45 }
  0x1f PF: > { %s16_s20 = sadd.s32 1, %s652_s20   ;;  %s759_s18 = smov %s648_s19 }
  0x20   : > { %p13_p5 = scmp.ge.s32.totalorder %s16_s20, 4   ;;  %s760_s19 = smov %s762_s21 }
  0x22   :  { %15 = sbr.rel (!%p13_p5) target bundleno = 2 (0x2), region = 93 }

</bundles_post_ra>
